<compile_context>
chip_gen: v7x
topology: tpu7x:2x2x1
jax: 0.10.0
libtpu: 0.0.40
codegen_flags: <defaults>
</compile_context>

<pallas_src>
import jax
import jax.numpy as jnp
from jax.experimental import pallas as pl
from jax.experimental.pallas import tpu as pltpu


# ----------------------------- helpers ---------------------------------------

def _round_up(x, m):
    return -(-x // m) * m


def _cdiv(a, b):
    return -(-a // b)


# ----------------------------- parameter prep --------------------------------

def prepare_caduceus_embedding(emb_weight, complement_map=None, rcps=False,
                               table_dtype=None, max_table_bytes=4 << 20):
    """One-time transform of nn.Embedding weights into the kernel table.

    Returns a dict with:
      table : (k*Vb, k*Wp) block-diagonal lookup table (lane-dense)
      k     : tokens packed per output row
      vb    : per-token one-hot width (V or 2V)
      v     : vocab size (row offset of the RC sub-block)
      w     : logical per-token output width (D or 2D)
      w_pad : padded per-token output width (multiple-of-128 friendly)
      rcps  : bool
    """
    V, D = emb_weight.shape
    table_dtype = emb_weight.dtype if table_dtype is None else jnp.dtype(table_dtype)
    emb = emb_weight.astype(table_dtype)

    if rcps:
        assert complement_map is not None
        # Complement + d_model flip baked into a second table (done ONCE).
        emb_rc = jnp.flip(emb[complement_map], axis=-1)                 # (V, D)
        per_tok = jnp.zeros((2 * V, 2 * D), table_dtype)
        per_tok = per_tok.at[:V, :D].set(emb)
        per_tok = per_tok.at[V:, D:].set(emb_rc)
        vb, w = 2 * V, 2 * D
    else:
        per_tok = emb
        vb, w = V, D

    # Lane-dense packing: k consecutive tokens share one 128-lane output row.
    if w % 128 == 0:
        k, w_pad = 1, w
    elif 128 % w == 0:
        k, w_pad = 128 // w, w
    else:
        # Width neither divides nor is a multiple of 128 (e.g. d_model=118):
        # zero-pad output columns so stores are unmasked; wrapper slices pad.
        k, w_pad = 1, _round_up(w, 128)
        per_tok = jnp.pad(per_tok, ((0, 0), (0, w_pad - w)))

    # Cap k so the k^2 block-diagonal table stays small (VMEM headroom and
    # MXU contraction-dim work); k stays a power of two.
    itemsize = jnp.dtype(table_dtype).itemsize
    k = min(k, 16)
    while k > 1 and (k * vb) * (k * w_pad) * itemsize > max_table_bytes:
        k //= 2

    if k == 1:
        table = per_tok
    else:
        table = jnp.zeros((k * vb, k * w_pad), table_dtype)
        for j in range(k):
            table = table.at[j * vb:(j + 1) * vb,
                             j * w_pad:(j + 1) * w_pad].set(per_tok)

    return dict(table=table, k=k, vb=vb, v=V, w=w, w_pad=w_pad, rcps=rcps)


# ----------------------------- kernel ----------------------------------------

def _make_kernel(*, k, vb, v_fwd, rcps, dot_dtype):
    """Embedding-lookup kernel.

    ids refs: (rows, k) int32, k tokens per row (row-major token order).
    table:    (k*vb, k*w_pad) block-diagonal table, resident in VMEM.
    out:      (rows, k*w_pad) lane-dense rows -> unmasked stores.
    """
    def kernel(*refs):
        if rcps:
            ids_f_ref, ids_r_ref, table_ref, out_ref = refs
        else:
            ids_f_ref, table_ref, out_ref = refs
        rows = ids_f_ref.shape[0]
        kv = table_ref.shape[0]

        ids_f = ids_f_ref[...]                              # (rows, k) int32
        ids_r = ids_r_ref[...] if rcps else None
        col = jax.lax.broadcasted_iota(jnp.int32, (rows, kv), 1)

        # Fused one-hot: 2k int32 compares OR-ed into one boolean mask, then a
        # single select + cast (replaces 2k f32 compare/cast/add passes).
        # NOTE: ids are assumed < vocab_size; out-of-range ids would silently
        # select the RC sub-block (clamp upstream if special tokens exist).
        hit = None
        for j in range(k):
            hj = (col == ids_f[:, j:j + 1] + j * vb)
            if rcps:
                hj = hj | (col == ids_r[:, j:j + 1] + (j * vb + v_fwd))
            hit = hj if hit is None else (hit | hj)

        oh = jnp.where(hit, 1.0, 0.0).astype(dot_dtype)
        acc = jnp.dot(oh, table_ref[...], preferred_element_type=jnp.float32)
        out_ref[...] = acc.astype(out_ref.dtype)

    return kernel


# ----------------------------- forward ---------------------------------------

def caduceus_embeddings(input_ids, params, *, tm=8192, out_dtype=None):
    """CaduceusEmbeddings forward.

    input_ids: (B, S) integer tokens
    params:    output of prepare_caduceus_embedding(...)
    Returns (B, S, D) if rcps=False else (B, S, 2*D).  Output dtype defaults
    to the table dtype (use a bf16 table for the fast bf16 path).
    """
    table, k, vb, v, w, w_pad, rcps = (params["table"], params["k"], params["vb"],
                                       params["v"], params["w"], params["w_pad"],
                                       params["rcps"])
    B, S = input_ids.shape
    N = B * S
    out_dtype = table.dtype if out_dtype is None else jnp.dtype(out_dtype)
    lane_w = k * w_pad

    # ---- token tile selection -------------------------------------------------
    tm = _round_up(max(int(tm), 128), 128)
    # Keep >= 2 grid steps whenever the input allows it (v7x megacore), and
    # shrink for tiny inputs.
    half = max(128, _round_up(_cdiv(N, 2), 128))
    tm = min(tm, half)

    # Generation-aware VMEM budget (v7x has 64 MiB; v5e/v6e have 128 MiB).
    try:
        vmem_cap = int(pltpu.get_tpu_info().vmem_capacity_bytes)
    except Exception:
        vmem_cap = 64 << 20  # safe lower bound (v7x)

    out_isz = jnp.dtype(out_dtype).itemsize
    tbl_isz = table.dtype.itemsize

    def vmem_needed(t):
        rows = t // k
        out_blocks = 2 * rows * lane_w * out_isz                 # double-buffered
        ids_blocks = 2 * rows * k * 4 * (2 if rcps else 1)       # double-buffered
        tbl_blocks = 2 * table.size * tbl_isz                    # conservative
        temps = rows * (k * vb) * 4 + rows * lane_w * 4          # one-hot + acc
        return out_blocks + ids_blocks + tbl_blocks + temps

    while tm > 256 and vmem_needed(tm) > int(0.6 * vmem_cap):
        tm = _round_up(tm // 2, 128)

    n_pad = _round_up(N, tm)
    grid = n_pad // tm
    rows_blk = tm // k           # multiple of 8 (tm % 128 == 0, k | 128)

    # ---- operands --------------------------------------------------------------
    ids_f = input_ids.reshape(N).astype(jnp.int32)
    ids_f = jnp.pad(ids_f, (0, n_pad - N)).reshape(n_pad // k, k)
    operands = [ids_f]
    in_specs = [pl.BlockSpec((rows_blk, k), lambda i: (i, 0))]

    if rcps:
        # Sequence flip (output dim -2) == reversed id stream; the complement
        # + d_model flip already live in the precomputed table.
        ids_r = input_ids[:, ::-1].reshape(N).astype(jnp.int32)
        ids_r = jnp.pad(ids_r, (0, n_pad - N)).reshape(n_pad // k, k)
        operands.append(ids_r)
        in_specs.append(pl.BlockSpec((rows_blk, k), lambda i: (i, 0)))

    operands.append(table)
    in_specs.append(pl.BlockSpec(table.shape, lambda i: (0, 0)))

    kernel = _make_kernel(k=k, vb=vb, v_fwd=v, rcps=rcps, dot_dtype=table.dtype)

    needed = vmem_needed(tm)
    vmem_limit = max(16 << 20, int(min(needed + (8 << 20), int(0.9 * vmem_cap))))

    out = pl.pallas_call(
        kernel,
        out_shape=jax.ShapeDtypeStruct((n_pad // k, lane_w), out_dtype),
        grid=(grid,),
        in_specs=in_specs,
        out_specs=pl.BlockSpec((rows_blk, lane_w), lambda i: (i, 0)),
        compiler_params=pltpu.CompilerParams(
            dimension_semantics=("parallel",),
            vmem_limit_bytes=vmem_limit),
    )(*operands)

    # Packed case (k>1): (n_pad//k, k*w) row-major is bit-identical to
    # (n_pad, w) -> no-op views.  Padded case (k==1, w_pad>w): slice pad off.
    out = out.reshape(n_pad // k * k if w_pad == w else n_pad, -1)
    out = out.reshape(n_pad, w_pad)[:N]
    if w_pad != w:
        out = out[:, :w]
    return out.reshape(B, S, w)


# ----------------------------- main -------------------------------------------

if __name__ == "__main__":
    # Small config consistent with CaduceusConfig: vocab_size=16, d_model=32.
    B, S = 2, 8
    V, D = 16, 32

    key = jax.random.PRNGKey(0)
    k_emb, k_ids = jax.random.split(key)

    emb_weight = jax.random.normal(k_emb, (V, D), dtype=jnp.float32)
    input_ids = jax.random.randint(k_ids, (B, S), 0, V, dtype=jnp.int32)

    # Deterministic complement map (involution): 7<->10, 8<->9, rest identity.
    comp = list(range(V))
    comp[7], comp[10] = 10, 7
    comp[8], comp[9] = 9, 8
    complement_map = jnp.asarray(comp, dtype=jnp.int32)

    # References (pure JAX).
    fwd_ref = emb_weight[input_ids]
    rc_ref = jnp.flip(emb_weight[complement_map[input_ids]], axis=(-2, -1))
    ref_rc = jnp.concatenate([fwd_ref, rc_ref], axis=-1)

    # ---- RCPS path, f32 table/output (exact parity with the reference) ----
    params_rc = prepare_caduceus_embedding(emb_weight, complement_map, rcps=True)
    out = jax.block_until_ready(caduceus_embeddings(input_ids, params_rc))
    assert out.shape == (B, S, 2 * D)
    assert jnp.allclose(out, ref_rc, atol=1e-5), "rcps f32 mismatch vs reference"

    # ---- RCPS path, bf16 table/output (recommended bandwidth/MXU path) ----
    params_rc_bf = prepare_caduceus_embedding(
        emb_weight, complement_map, rcps=True, table_dtype=jnp.bfloat16)
    out_bf = jax.block_until_ready(caduceus_embeddings(input_ids, params_rc_bf))
    assert out_bf.shape == (B, S, 2 * D) and out_bf.dtype == jnp.bfloat16
    assert jnp.allclose(out_bf.astype(jnp.float32), ref_rc, atol=2e-2, rtol=2e-2), \
        "rcps bf16 mismatch vs reference"

    # ---- Plain nn.Embedding path ----
    params_plain = prepare_caduceus_embedding(emb_weight, rcps=False)
    out_plain = jax.block_until_ready(caduceus_embeddings(input_ids, params_plain))
    assert out_plain.shape == (B, S, D)
    assert jnp.allclose(out_plain, fwd_ref, atol=1e-5), "plain mismatch"

    print("KERNEL_OK")
</pallas_src>

<mosaic_0001>
module attributes {stable_mosaic.version = 11 : i64} {
  func.func @kernel(%arg0: i32, %arg1: memref<64x2xi32, #tpu.memory_space<vmem>>, %arg2: memref<64x2xi32, #tpu.memory_space<vmem>>, %arg3: memref<64x128xf32, #tpu.memory_space<vmem>>, %arg4: memref<64x128xf32, #tpu.memory_space<vmem>>) attributes {dimension_semantics = [#tpu.dimension_semantics<parallel>], iteration_bounds = array<i64: 1>, scalar_prefetch = 0 : i64, scratch_operands = 0 : i64, tpu.core_type = #tpu.core_type<tc>, window_params = [{transform_indices = @transform_0, window_bounds = array<i64: 64, 2>}, {transform_indices = @transform_1, window_bounds = array<i64: 64, 2>}, {pipeline_mode = #tpu.pipeline_mode<synchronous>, transform_indices = @transform_2, window_bounds = array<i64: 64, 128>}, {transform_indices = @transform_3, window_bounds = array<i64: 64, 128>}]} {
    %c0 = arith.constant 0 : index
    %c0_0 = arith.constant 0 : index
    %0 = vector.load %arg1[%c0, %c0_0] : memref<64x2xi32, #tpu.memory_space<vmem>>, vector<64x2xi32>
    %c0_1 = arith.constant 0 : index
    %c0_2 = arith.constant 0 : index
    %1 = vector.load %arg2[%c0_1, %c0_2] : memref<64x2xi32, #tpu.memory_space<vmem>>, vector<64x2xi32>
    %2 = tpu.iota {dimensions = array<i32: 1>} : vector<64x64xi32>
    %3 = vector.extract_strided_slice %0 {offsets = [0, 0], sizes = [64, 1], strides = [1, 1]} : vector<64x2xi32> to vector<64x1xi32>
    %c0_i32 = arith.constant 0 : i32
    %4 = vector.broadcast %c0_i32 : i32 to vector<64x1xi32>
    %5 = arith.addi %3, %4 : vector<64x1xi32>
    %6 = vector.broadcast %5 : vector<64x1xi32> to vector<64x64xi32>
    %7 = arith.cmpi eq, %2, %6 : vector<64x64xi32>
    %8 = vector.extract_strided_slice %1 {offsets = [0, 0], sizes = [64, 1], strides = [1, 1]} : vector<64x2xi32> to vector<64x1xi32>
    %c16_i32 = arith.constant 16 : i32
    %9 = vector.broadcast %c16_i32 : i32 to vector<64x1xi32>
    %10 = arith.addi %8, %9 : vector<64x1xi32>
    %11 = vector.broadcast %10 : vector<64x1xi32> to vector<64x64xi32>
    %12 = arith.cmpi eq, %2, %11 : vector<64x64xi32>
    %13 = arith.ori %7, %12 : vector<64x64xi1>
    %14 = vector.extract_strided_slice %0 {offsets = [0, 1], sizes = [64, 1], strides = [1, 1]} : vector<64x2xi32> to vector<64x1xi32>
    %c32_i32 = arith.constant 32 : i32
    %15 = vector.broadcast %c32_i32 : i32 to vector<64x1xi32>
    %16 = arith.addi %14, %15 : vector<64x1xi32>
    %17 = vector.broadcast %16 : vector<64x1xi32> to vector<64x64xi32>
    %18 = arith.cmpi eq, %2, %17 : vector<64x64xi32>
    %19 = vector.extract_strided_slice %1 {offsets = [0, 1], sizes = [64, 1], strides = [1, 1]} : vector<64x2xi32> to vector<64x1xi32>
    %c48_i32 = arith.constant 48 : i32
    %20 = vector.broadcast %c48_i32 : i32 to vector<64x1xi32>
    %21 = arith.addi %19, %20 : vector<64x1xi32>
    %22 = vector.broadcast %21 : vector<64x1xi32> to vector<64x64xi32>
    %23 = arith.cmpi eq, %2, %22 : vector<64x64xi32>
    %24 = arith.ori %18, %23 : vector<64x64xi1>
    %25 = arith.ori %13, %24 : vector<64x64xi1>
    %cst = arith.constant 1.000000e+00 : f32
    %cst_3 = arith.constant 0.000000e+00 : f32
    %26 = vector.broadcast %cst : f32 to vector<64x64xf32>
    %27 = vector.broadcast %cst_3 : f32 to vector<64x64xf32>
    %28 = arith.select %25, %26, %27 : vector<64x64xi1>, vector<64x64xf32>
    %c0_4 = arith.constant 0 : index
    %c0_5 = arith.constant 0 : index
    %29 = vector.load %arg3[%c0_4, %c0_5] : memref<64x128xf32, #tpu.memory_space<vmem>>, vector<64x128xf32>
    %cst_6 = arith.constant dense<0.000000e+00> : vector<64x128xf32>
    %30 = tpu.matmul %28, %29, %cst_6 {dimension_numbers = #tpu.dot_dimension_numbers<[1], [0], [0], [1], [0, 0, 1, 1], [], []>} : vector<64x64xf32>, vector<64x128xf32>, vector<64x128xf32> -> vector<64x128xf32>
    %c0_7 = arith.constant 0 : index
    %c0_8 = arith.constant 0 : index
    %31 = vector.load %arg4[%c0_7, %c0_8] : memref<64x128xf32, #tpu.memory_space<vmem>>, vector<64x128xf32>
    tpu.vector_store %arg4[%c0_7, %c0_8], %30 {strides = array<i32>} : memref<64x128xf32, #tpu.memory_space<vmem>>, vector<64x128xf32>,
    return
  }
  func.func @transform_0(%arg0: i32) -> (i32, i32) {
    %c0_i32 = arith.constant 0 : i32
    %c0_i32_0 = arith.constant 0 : i32
    return %arg0, %c0_i32 : i32, i32
  }
  func.func @transform_1(%arg0: i32) -> (i32, i32) {
    %c0_i32 = arith.constant 0 : i32
    %c0_i32_0 = arith.constant 0 : i32
    return %arg0, %c0_i32 : i32, i32
  }
  func.func @transform_2(%arg0: i32) -> (i32, i32) {
    %c0_i32 = arith.constant 0 : i32
    %c0_i32_0 = arith.constant 0 : i32
    %c0_i32_1 = arith.constant 0 : i32
    return %c0_i32, %c0_i32_0 : i32, i32
  }
  func.func @transform_3(%arg0: i32) -> (i32, i32) {
    %c0_i32 = arith.constant 0 : i32
    %c0_i32_0 = arith.constant 0 : i32
    return %arg0, %c0_i32 : i32, i32
  }
}

</mosaic_0001>

<bundles_post_ra>
// kernel: tpu_custom_call.1
= control target key start
LH: loop header
LB: loop body
LE: loop exit
PB: predicated region body
PF: predicated region fallthrough
CT: control target
= control target key end

     0   :  { %v495_v2 = vmov 0   ;;  %s676_s0 = inlined_call_operand.vmem [shape: s32[64,2], index: 0, kind: input, shape index: {}]   ;;  %s677_s1 = inlined_call_operand.vmem [shape: s32[64,2], index: 1, kind: input, shape index: {}]   ;;  %s678_s2 = inlined_call_operand.vmem [shape: f32[64,128], index: 2, kind: input, shape index: {}]   ;;  %s679_s3 = inlined_call_operand.hbm [shape: f32[64,128], index: 3, kind: output, shape index: {}]  }
   0x1   :  { %v15_v0 = vld [vmem:[%s676_s0] sm:$0xff]  ;;  %461 = vset.pattern.permute.xlu0 %v495_v2  ;;  %462 = vset.pattern.permute.xlu1 %v495_v2  ;;  %v20_v7 = vld [vmem:[%s676_s0 + $0x28] sm:$0xff] }
   0x2   :  { %v23_v1 = vld [vmem:[%s677_s1] sm:$0xff]  ;;  %34 = vperm.xlu0 %461, %v15_v0  }
   0x3   :  { %v65_v3 = vadd.s32 16, %v23_v1  ;;  %v27_v4 = vld [vmem:[%s677_s1 + $0x20] sm:$0xff] }
   0x4   :  { %v19_v5 = vld [vmem:[%s676_s0 + $0x20] sm:$0xff]  ;;  %v69_v6 = vadd.s32 16, %v27_v4 }
   0x5   :  { %74 = vperm.xlu1 %462, %v65_v3  }
   0x6   :  { %46 = vperm.xlu0 %461, %v19_v5  }
   0x9   :  { %86 = vperm.xlu1 %462, %v69_v6  }
   0xa   :  { %8 = vsyncpa [#allocation3], 0  ;;  %v117_v8 = vadd.s32 32, %v19_v5  ;;  %49 = vperm.xlu0 %461, %v20_v7   ;;  %v496_v9 = vmov 1   ;;  %v542_v10 = vld [vmem:[%s676_s0 + $0x30] sm:$0xff]  ;;  %v153_v11 = vadd.s32 48, %v23_v1  ;;  %v31_v60 = vlaneseq }
   0xb   :  { %v548_v12 = vld [vmem:[%s676_s0 + $0x38] sm:$0xff]  ;;  %v16_v13 = vld [vmem:[%s676_s0 + $0x8] sm:$0xff]  ;;  %v113_v15 = vadd.s32 32, %v15_v0  ;;  %v217_v16 = vld [vmem:[%s678_s2] sm:$0xff]  ;;  %v157_v21 = vadd.s32 48, %v27_v4  ;;  %v118_v30 = vadd.s32 32, %v20_v7 }
   0xc   :  { %v24_v14 = vld [vmem:[%s677_s1 + $0x8] sm:$0xff]  ;;  %v219_v22 = vld [vmem:[%s678_s2 + $0x10] sm:$0xff]  ;;  %v220_v23 = vld [vmem:[%s678_s2 + $0x18] sm:$0xff]  ;;  %v114_v26 = vadd.s32 32, %v16_v13  ;;  %v119_v47 = vadd.s32 32, %v542_v10  ;;  %v120_v52 = vadd.s32 32, %v548_v12 }
   0xd   :  { %463 = vset.pattern.permute.xlu1 %v496_v9  ;;  %v218_v17 = vld [vmem:[%s678_s2 + $0x8] sm:$0xff]  ;;  %v66_v18 = vadd.s32 16, %v24_v14  ;;  %v435_v25 = vpack.c.bf16 %v220_v23, %v219_v22  ;;  %v221_v27 = vld [vmem:[%s678_s2 + $0x20] sm:$0xff]  ;;  %v17_v32 = vld [vmem:[%s676_s0 + $0x10] sm:$0xff]  ;;  %v154_v36 = vadd.s32 48, %v24_v14  ;;  %v611_v63 = vand.u32 127, %v31_v60 }
   0xe   :  { %134 = vperm.xlu1 %463, %v117_v8   ;;  %52 = vperm.xlu0 %461, %v542_v10   ;;  %v431_v19 = vpack.c.bf16 %v218_v17, %v217_v16  ;;  %v28_v20 = vld [vmem:[%s677_s1 + $0x28] sm:$0xff]  ;;  %v223_v33 = vld [vmem:[%s678_s2 + $0x30] sm:$0xff]  ;;  %v224_v34 = vld [vmem:[%s678_s2 + $0x38] sm:$0xff]  ;;  %v115_v37 = vadd.s32 32, %v17_v32  ;;  %vm225_vm8 = vcmask 523264   ;;  %v497_v5 = vmov 0.0  }
   0xf   :  { %v70_v24 = vadd.s32 16, %v28_v20  ;;  %v222_v28 = vld [vmem:[%s678_s2 + $0x28] sm:$0xff]  ;;  %v158_v31 = vadd.s32 48, %v28_v20  ;;  %v443_v35 = vpack.c.bf16 %v224_v34, %v223_v33  ;;  %v29_v38 = vld [vmem:[%s677_s1 + $0x30] sm:$0xff]  ;;  %v18_v41 = vld [vmem:[%s676_s0 + $0x18] sm:$0xff] }
  0x10   :  { %447 = vmatprep.subr.bf16.mxu1 %v431_v19  ;;  %432 = vmatprep.subr.bf16.mxu0 %v431_v19  ;;  %v439_v29 = vpack.c.bf16 %v222_v28, %v221_v27  ;;  %v159_v39 = vadd.s32 48, %v29_v38  ;;  %v25_v40 = vld [vmem:[%s677_s1 + $0x10] sm:$0xff]  ;;  %v116_v43 = vadd.s32 32, %v18_v41  ;;  %v30_v44 = vld [vmem:[%s677_s1 + $0x38] sm:$0xff]  ;;  %v71_v45 = vadd.s32 16, %v29_v38 }
  0x11   :  { %451 = vmatpush3.bf16.msra.mxu1 %v431_v19  ;;  %434 = vmatpush3.bf16.msra.mxu0 %v431_v19  ;;  %v67_v42 = vadd.s32 16, %v25_v40  ;;  %v160_v46 = vadd.s32 48, %v30_v44  ;;  %v155_v48 = vadd.s32 48, %v25_v40  ;;  %v26_v49 = vld [vmem:[%s677_s1 + $0x18] sm:$0xff]  ;;  %v72_v51 = vadd.s32 16, %v30_v44  ;;  %s498_s1 = smov [#allocation2]  }
  0x12   :  { %162 = vperm.xlu1 %463, %v153_v11   ;;  %55 = vperm.xlu0 %461, %v548_v12   ;;  %v68_v50 = vadd.s32 16, %v26_v49  ;;  %v156_v53 = vadd.s32 48, %v26_v49  ;;  %s368_s4 = sshll.u32 %s498_s1, 4  ;;  %s369_s4 = int_to_ptr.vmem [resolvable:$true] %s368_s4 }
  0x13   :  { %448 = vmatprep.subr.bf16.mxu1 %v435_v25  ;;  %436 = vmatprep.subr.bf16.mxu0 %v435_v25  ;;  %s471_s5 = scalar_lea.vmem %s369_s4, 1024  ;;  %p476_p1 = scmp.lt.s32.totalorder %s369_s4, %s369_s4 }
  0x14   :  { %p472_p0 = scmp.ne.s32.totalorder %s369_s4, %s471_s5  ;;  %p477_p2 = scmp.lt.s32.totalorder %s471_s5, %s471_s5 }
  0x15   :  { %452 = vmatpush3.bf16.msra.mxu1 %v435_v25  ;;  %438 = vmatpush3.bf16.msra.mxu0 %v435_v25 }
  0x16   :  { %464 = vset.pattern.permute.xlu1 %v495_v2  ;;  %469 = vset.pattern.permute.xlu0 %v496_v9  ;;  %p478_p3 = por %p477_p2, %p476_p1 }
  0x17   :  { %37 = vperm.xlu1 %464, %v16_v13   ;;  %122 = vperm.xlu0 %469, %v113_v15  }
  0x18   :  { %449 = vmatprep.subr.bf16.mxu1 %v439_v29  ;;  %440 = vmatprep.subr.bf16.mxu0 %v439_v29  ;;  %p479_p4 = pnand %p478_p3, %p472_p0 }
  0x19   :  { %453 = vmatpush3.bf16.msra.mxu1 %v439_v29  ;;  %442 = vmatpush3.bf16.msra.mxu0 %v439_v29 }
  0x1a   :  { %450 = vmatprep.subr.bf16.mxu1 %v443_v35  ;;  %444 = vmatprep.subr.bf16.mxu0 %v443_v35 }
  0x1b   :  { %77 = vperm.xlu1 %464, %v66_v18   ;;  %174 = vperm.xlu0 %469, %v157_v21  }
  0x1d   :  { %454 = vmatpush3.bf16.msra.mxu1 %v443_v35  ;;  %446 = vmatpush3.bf16.msra.mxu0 %v443_v35 }
  0x1f   :  { %89 = vperm.xlu1 %464, %v70_v24   ;;  %125 = vperm.xlu0 %469, %v114_v26  }
  0x23   :  { %465 = vset.pattern.permute.xlu1 %v496_v9  ;;  %177 = vperm.xlu0 %469, %v158_v31  }
  0x24   :  { %137 = vperm.xlu1 %465, %v118_v30  }
  0x27   :  { %128 = vperm.xlu0 %469, %v115_v37  }
  0x28   :  { %165 = vperm.xlu1 %465, %v154_v36  }
  0x2b   :  { %180 = vperm.xlu0 %469, %v159_v39  }
  0x2c   :  { %466 = vset.pattern.permute.xlu1 %v495_v2 }
  0x2d   :  { %40 = vperm.xlu1 %466, %v17_v32  }
  0x2f   :  { %131 = vperm.xlu0 %469, %v116_v43  }
  0x31   :  { %80 = vperm.xlu1 %466, %v67_v42  }
  0x33   :  { %183 = vperm.xlu0 %469, %v160_v46  }
  0x35   :  { %92 = vperm.xlu1 %466, %v71_v45  }
  0x39   :  { %467 = vset.pattern.permute.xlu1 %v496_v9 }
  0x3a   :  { %140 = vperm.xlu1 %467, %v119_v47  }
  0x3e   :  { %168 = vperm.xlu1 %467, %v155_v48  }
  0x42   :  { %468 = vset.pattern.permute.xlu1 %v495_v2 }
  0x43   :  { %43 = vperm.xlu1 %468, %v18_v41  }
  0x47   :  { %83 = vperm.xlu1 %468, %v68_v50  }
  0x4b   :  { %95 = vperm.xlu1 %468, %v72_v51  }
  0x4f   :  { %470 = vset.pattern.permute.xlu1 %v496_v9 }
  0x50   :  { %143 = vperm.xlu1 %470, %v120_v52  }
  0x54   :  { %171 = vperm.xlu1 %470, %v156_v53  }
  0x81   :  { %v35_v54 = vpop.permute.xlu0 %34 }
  0x82   :  { %vm57_vm1 = vcmp.eq.s32.totalorder %v611_v63, %v35_v54 }
  0x84   :  { %v75_v55 = vpop.permute.xlu1 %74 }
  0x85   :  { %v47_v56 = vpop.permute.xlu0 %46  ;;  %vm97_vm0 = vcmp.eq.s32.totalorder %v611_v63, %v75_v55 }
  0x86   :  { %vm105_vm2 = vmor %vm57_vm1, %vm97_vm0  ;;  %vm61_vm6 = vcmp.eq.s32.totalorder %v611_v63, %v47_v56 }
  0x88   :  { %v87_v57 = vpop.permute.xlu1 %86 }
  0x89   :  { %v50_v58 = vpop.permute.xlu0 %49  ;;  %vm101_vm5 = vcmp.eq.s32.totalorder %v611_v63, %v87_v57 }
  0x8a   :  { %vm109_vm10 = vmor %vm61_vm6, %vm101_vm5  ;;  %vm62_vm15 = vcmp.eq.s32.totalorder %v611_v63, %v50_v58 }
  0x8d   :  { %v135_v59 = vpop.permute.xlu1 %134  ;;  %v53_v61 = vpop.permute.xlu0 %52 }
  0x8e   :  { %vm149_vm11 = vcmp.eq.s32.totalorder %v611_v63, %v135_v59 }
  0x91   :  { %v163_v62 = vpop.permute.xlu1 %162  ;;  %v613_v0 = vpop.permute.xlu0 %55 }
  0x92   :  { %vm185_vm3 = vcmp.eq.s32.totalorder %v611_v63, %v163_v62 }
  0x96   :  { %v38_v1 = vpop.permute.xlu1 %37  ;;  %v123_v2 = vpop.permute.xlu0 %122 }
  0x97   :  { %vm145_vm4 = vcmp.eq.s32.totalorder %v611_v63, %v123_v2 }
  0x98   :  { %vm193_vm7 = vmor %vm145_vm4, %vm185_vm3 }
  0x99   :  { %vm201_vm9 = vmor %vm105_vm2, %vm193_vm7  ;;  %vm58_vm7 = vcmp.eq.s32.totalorder %v611_v63, %v38_v1 }
  0x9a   :  { %v78_v3 = vpop.permute.xlu1 %77  ;;  %v175_v4 = vpop.permute.xlu0 %174  ;;  %v209_v6 = vsel %vm201_vm9, 1.0, %v497_v5 }
  0x9b   :  { %vm189_vm12 = vcmp.eq.s32.totalorder %v611_v63, %v175_v4  ;;  %419 = vmatprep.mubr.msk.f32.mxu0 %vm225_vm8, %v209_v6  ;;  %vm98_vm2 = vcmp.eq.s32.totalorder %v611_v63, %v78_v3 }
  0x9c   :  { %vm197_vm13 = vmor %vm149_vm11, %vm189_vm12 }
  0x9d   :  { %vm205_vm14 = vmor %vm109_vm10, %vm197_vm13 }
  0x9e   :  { %v90_v7 = vpop.permute.xlu1 %89  ;;  %v126_v8 = vpop.permute.xlu0 %125  ;;  %v213_v9 = vsel %vm205_vm14, 1.0, %v497_v5  ;;  %vm106_vm10 = vmor %vm58_vm7, %vm98_vm2 }
  0x9f   :  { %425 = vmatprep.mubr.msk.f32.mxu1 %vm225_vm8, %v213_v9  ;;  %vm102_vm0 = vcmp.eq.s32.totalorder %v611_v63, %v90_v7  ;;  %vm146_vm5 = vcmp.eq.s32.totalorder %v611_v63, %v126_v8 }
  0xa0   :  { %vm110_vm3 = vmor %vm62_vm15, %vm102_vm0  ;;  %vm63_vm15 = vcmp.eq.s32.totalorder %v611_v63, %v53_v61 }
  0xa2   :  { %v178_v11 = vpop.permute.xlu0 %177 }
  0xa3   :  { %v138_v10 = vpop.permute.xlu1 %137  ;;  %vm190_vm4 = vcmp.eq.s32.totalorder %v611_v63, %v178_v11 }
  0xa4   :  { %vm150_vm1 = vcmp.eq.s32.totalorder %v611_v63, %v138_v10 }
  0xa5   :  { %vm198_vm6 = vmor %vm150_vm1, %vm190_vm4 }
  0xa6   :  { %vm206_vm9 = vmor %vm110_vm3, %vm198_vm6  ;;  %v129_v17 = vpop.permute.xlu0 %128 }
  0xa7   :  { %v166_v12 = vpop.permute.xlu1 %165  ;;  %v214_v13 = vsel %vm206_vm9, 1.0, %v497_v5  ;;  %vm147_vm7 = vcmp.eq.s32.totalorder %v611_v63, %v129_v17 }
  0xa8   :  { %vm186_vm11 = vcmp.eq.s32.totalorder %v611_v63, %v166_v12  ;;  %426 = vmatmul.mubr.msk.f32.vlgmr.msra.gmra.mrb[0].mxu1 %vm225_vm8, %v214_v13 }
  0xa9   :  { %vm194_vm12 = vmor %vm146_vm5, %vm186_vm11 }
  0xaa   :  { %vm202_vm13 = vmor %vm106_vm10, %vm194_vm12  ;;  %v181_v19 = vpop.permute.xlu0 %180 }
  0xab   :  { %v210_v14 = vsel %vm202_vm13, 1.0, %v497_v5  ;;  %vm191_vm0 = vcmp.eq.s32.totalorder %v611_v63, %v181_v19 }
  0xac   :  { %v41_v15 = vpop.permute.xlu1 %40  ;;  %420 = vmatmul.mubr.msk.f32.vlgmr.msra.gmra.mrb[0].mxu0 %vm225_vm8, %v210_v14 }
  0xad   :  { %vm59_vm6 = vcmp.eq.s32.totalorder %v611_v63, %v41_v15 }
  0xae   :  { %v132_v26 = vpop.permute.xlu0 %131 }
  0xb0   :  { %v81_v16 = vpop.permute.xlu1 %80 }
  0xb1   :  { %vm99_vm3 = vcmp.eq.s32.totalorder %v611_v63, %v81_v16 }
  0xb2   :  { %vm107_vm9 = vmor %vm59_vm6, %vm99_vm3  ;;  %v184_v28 = vpop.permute.xlu0 %183  ;;  %vm148_vm6 = vcmp.eq.s32.totalorder %v611_v63, %v132_v26 }
  0xb4   :  { %v93_v18 = vpop.permute.xlu1 %92 }
  0xb5   :  { %vm103_vm14 = vcmp.eq.s32.totalorder %v611_v63, %v93_v18 }
  0xb6   :  { %vm111_vm1 = vmor %vm63_vm15, %vm103_vm14  ;;  %vm64_vm14 = vcmp.eq.s32.totalorder %v611_v63, %v613_v0  ;;  %vm192_vm15 = vcmp.eq.s32.totalorder %v611_v63, %v184_v28 }
  0xb9   :  { %v141_v20 = vpop.permute.xlu1 %140 }
  0xba   :  { %vm151_vm2 = vcmp.eq.s32.totalorder %v611_v63, %v141_v20 }
  0xbb   :  { %vm199_vm4 = vmor %vm151_vm2, %vm191_vm0 }
  0xbc   :  { %vm207_vm5 = vmor %vm111_vm1, %vm199_vm4 }
  0xbd   :  { %v169_v21 = vpop.permute.xlu1 %168  ;;  %v215_v22 = vsel %vm207_vm5, 1.0, %v497_v5 }
  0xbe   :  { %vm187_vm10 = vcmp.eq.s32.totalorder %v611_v63, %v169_v21  ;;  %428 = vmatprep.mubr.msk.f32.mxu1 %vm225_vm8, %v215_v22 }
  0xbf   :  { %vm195_vm11 = vmor %vm147_vm7, %vm187_vm10 }
  0xc0   :  { %vm203_vm12 = vmor %vm107_vm9, %vm195_vm11 }
  0xc1   :  { %v211_v23 = vsel %vm203_vm12, 1.0, %v497_v5 }
  0xc2   :  { %v44_v24 = vpop.permute.xlu1 %43  ;;  %422 = vmatprep.mubr.msk.f32.mxu0 %vm225_vm8, %v211_v23 }
  0xc3   :  { %vm60_vm5 = vcmp.eq.s32.totalorder %v611_v63, %v44_v24 }
  0xc6   :  { %v84_v25 = vpop.permute.xlu1 %83 }
  0xc7   :  { %vm100_vm2 = vcmp.eq.s32.totalorder %v611_v63, %v84_v25 }
  0xc8   :  { %vm108_vm7 = vmor %vm60_vm5, %vm100_vm2 }
  0xca   :  { %v96_v27 = vpop.permute.xlu1 %95 }
  0xcb   :  { %vm104_vm13 = vcmp.eq.s32.totalorder %v611_v63, %v96_v27 }
  0xcc   :  { %vm112_vm0 = vmor %vm64_vm14, %vm104_vm13 }
  0xcf   :  { %v144_v29 = vpop.permute.xlu1 %143 }
  0xd0   :  { %vm152_vm1 = vcmp.eq.s32.totalorder %v611_v63, %v144_v29 }
  0xd1   :  { %vm200_vm3 = vmor %vm152_vm1, %vm192_vm15 }
  0xd2   :  { %vm208_vm4 = vmor %vm112_vm0, %vm200_vm3 }
  0xd3   :  { %v172_v30 = vpop.permute.xlu1 %171  ;;  %v216_v31 = vsel %vm208_vm4, 1.0, %v497_v5 }
  0xd4   :  { %vm188_vm9 = vcmp.eq.s32.totalorder %v611_v63, %v172_v30  ;;  %429 = vmatmul.mubr.msk.f32.gmra.mrb[2].mxu1 %vm225_vm8, %v216_v31 }
  0xd5   :  { %vm196_vm10 = vmor %vm148_vm6, %vm188_vm9 }
  0xd6   :  { %vm204_vm11 = vmor %vm108_vm7, %vm196_vm10 }
  0xd7   :  { %v212_v32 = vsel %vm204_vm11, 1.0, %v497_v5 }
  0xd8   :  { %423 = vmatmul.mubr.msk.f32.gmra.mrb[2].mxu0 %vm225_vm8, %v212_v32 }
 0x17b   :  { %v427_v33 = vpop.f32.mrb[0].mxu1 }
 0x17c   :  { %360 = vst [vmem:[#allocation2 + $0x28] sm:$0xff] %v427_v33  ;;  %v336_v34 = vpop.f32.mrb[1].mxu1 }
 0x17d   :  { %359 = vst [vmem:[#allocation2 + $0x20] sm:$0xff] %v336_v34 }
 0x17f   :  { %v421_v35 = vpop.f32.mrb[0].mxu0 }
 0x180   :  { %356 = vst [vmem:[#allocation2 + $0x8] sm:$0xff] %v421_v35  ;;  %v316_v36 = vpop.f32.mrb[1].mxu0 }
 0x181   :  { %355 = vst [vmem:[#allocation2] sm:$0xff] %v316_v36 }
 0x1a7   :  { %v430_v37 = vpop.f32.mrb[2].mxu1 }
 0x1a8   :  { %362 = vst [vmem:[#allocation2 + $0x38] sm:$0xff] %v430_v37  ;;  %v346_v38 = vpop.f32.mrb[3].mxu1 }
 0x1a9   :  { %361 = vst [vmem:[#allocation2 + $0x30] sm:$0xff] %v346_v38 }
 0x1ab   :  { %v424_v39 = vpop.f32.mrb[2].mxu0 }
 0x1ac   :  { %358 = vst [vmem:[#allocation2 + $0x18] sm:$0xff] %v424_v39  ;;  %v326_v40 = vpop.f32.mrb[3].mxu0 }
 0x1ad   :  { %357 = vst [vmem:[#allocation2 + $0x10] sm:$0xff] %v326_v40 }
 0x1ae   :  { %482 = shalt.err (!%p479_p4)
}
 0x1af   :  { %s483_s8 = scalar_lea.hbm %s679_s3, 1024 }
 0x1b0   :  { %p484_p5 = scmp.ne.s32.totalorder %s679_s3, %s483_s8  ;;  %p487_p6 = scmp.lt.u32.totalorder %s483_s8, %s679_s3 }
 0x1b2   :  { %p489_p7 = pnand %p487_p6, %p484_p5 }
 0x1b4   :  { %492 = shalt.err (!%p489_p7)
}
 0x1b5   :  { %s499_s13 = smov 128   ;;  %s500_s14 = smov 8  }
 0x1b6   :  { %374 = dma.vmem_to_hbm [thread:$0]  %s369_s4, 1024, %s679_s3, [#allocation3], %s499_s13, %s499_s13, %s500_s14  }
 0x1b7   :  { %493 = dma.done.wait [#allocation3], 1024  }
 0x1b8   :  { %494 = vsyncadd [#allocation3], 4294966272 }
 0x1b9   :  { %378 = vsyncpa [#allocation3], 1 }

</bundles_post_ra>
